<compile_context>
chip_gen: v7x
topology: tpu7x:2x2x1
jax: 0.10.0
libtpu: 0.0.40
codegen_flags: <defaults>
</compile_context>

<pallas_src>
import jax
import jax.numpy as jnp
from jax.experimental import pallas as pl
from jax.experimental.pallas import tpu as pltpu


OUT_PAD = 128       # lane-dense output slab width (>= n_actions)
_MIN_TILE = 16      # bf16 sublane pair (also a multiple of f32's 8)
_MAX_TILE = 512


def _round_up(v, m):
    return ((v + m - 1) // m) * m


# --------------------------------------------------------------------------
# Kernel (shared by the full dueling path and advantages_only)
# --------------------------------------------------------------------------
def _dueling_kernel(x_ref, w1_ref, b1_ref, w2_ref, b2_ref, out_ref):
    """matmul -> ReLU -> matmul -> bias.  The dueling combine lives in w2/b2."""
    x = x_ref[...].astype(w1_ref.dtype)                      # in-kernel bf16 cast
    h = jnp.dot(x, w1_ref[...], preferred_element_type=jnp.float32)
    h = jnp.maximum(h + b1_ref[...], 0.0)                    # (TB, Kd) f32
    y = jnp.dot(h.astype(w2_ref.dtype), w2_ref[...],
                preferred_element_type=jnp.float32)
    out_ref[...] = (y + b2_ref[...]).astype(out_ref.dtype)   # (TB, OUT_PAD)


# --------------------------------------------------------------------------
# Parameter fusion (hoisted: call once per parameter update)
# --------------------------------------------------------------------------
def fuse_dueling_params(params, compute_dtype=jnp.bfloat16):
    """Build fused, lane-padded operands for the kernel.

    Returns {"full": (w1, b1, w2, b2), "adv": (w1, b1, w2, b2)}; biases stay
    f32, matmul weights are cast to `compute_dtype`.
    """
    feat, hd = params["wa1"].shape
    n_actions = params["wa2"].shape[1]
    assert n_actions <= OUT_PAD

    # ---- full dueling path: [adv | value] hidden, combine folded into W2 ----
    k_full = _round_up(2 * hd, 128)
    w1f = jnp.zeros((feat, k_full), jnp.float32)
    w1f = w1f.at[:, :hd].set(params["wa1"])
    w1f = w1f.at[:, hd:2 * hd].set(params["wv1"])
    b1f = jnp.zeros((1, k_full), jnp.float32)
    b1f = b1f.at[:, :hd].set(params["ba1"])
    b1f = b1f.at[:, hd:2 * hd].set(params["bv1"])

    wa2_centered = params["wa2"] - jnp.mean(params["wa2"], axis=1, keepdims=True)
    w2f = jnp.zeros((k_full, OUT_PAD), jnp.float32)
    w2f = w2f.at[:hd, :n_actions].set(wa2_centered)
    w2f = w2f.at[hd:2 * hd, :n_actions].set(
        jnp.broadcast_to(params["wv2"], (hd, n_actions)))
    b2f = jnp.zeros((1, OUT_PAD), jnp.float32)
    b2f = b2f.at[:, :n_actions].set(
        params["ba2"] - jnp.mean(params["ba2"], axis=1, keepdims=True)
        + params["bv2"])

    # ---- advantages_only path: value branch dropped entirely ----
    k_adv = _round_up(hd, 128)
    w1a = jnp.zeros((feat, k_adv), jnp.float32).at[:, :hd].set(params["wa1"])
    b1a = jnp.zeros((1, k_adv), jnp.float32).at[:, :hd].set(params["ba1"])
    w2a = (jnp.zeros((k_adv, OUT_PAD), jnp.float32)
           .at[:hd, :n_actions].set(params["wa2"]))
    b2a = jnp.zeros((1, OUT_PAD), jnp.float32).at[:, :n_actions].set(params["ba2"])

    return {
        "full": (w1f.astype(compute_dtype), b1f, w2f.astype(compute_dtype), b2f),
        "adv": (w1a.astype(compute_dtype), b1a, w2a.astype(compute_dtype), b2a),
    }


# --------------------------------------------------------------------------
# Forward wrapper
# --------------------------------------------------------------------------
def _choose_tb(batch):
    b_round = _round_up(max(batch, _MIN_TILE), _MIN_TILE)
    if b_round <= 2 * _MIN_TILE:
        return b_round                           # tiny batch: one tile
    # Large batch: >= 2 grid steps so "parallel" can use both v7x TCs.
    half = _round_up((b_round + 1) // 2, _MIN_TILE)
    return min(_MAX_TILE, half)


def dueling_forward(x_nchw, fused, n_actions, advantages_only=False,
                    out_dtype=jnp.bfloat16):
    """x_nchw: (B, C, H, W) in the producer's dtype.  fused: fuse_dueling_params()."""
    batch = x_nchw.shape[0]
    x = x_nchw.reshape(batch, -1)                             # nn.Flatten()
    feat = x.shape[1]
    w1, b1, w2, b2 = fused["adv"] if advantages_only else fused["full"]
    k_dim = w1.shape[1]

    tb = _choose_tb(batch)
    b_pad = _round_up(batch, tb)
    if b_pad != batch:                                        # only pad the remainder
        x = jnp.pad(x, ((0, b_pad - batch), (0, 0)))

    vmem_est = (2 * tb * feat * x.dtype.itemsize              # double-buffered input
                + 2 * tb * OUT_PAD * jnp.dtype(out_dtype).itemsize
                + feat * k_dim * w1.dtype.itemsize
                + k_dim * OUT_PAD * w2.dtype.itemsize
                + (k_dim + OUT_PAD) * 4)
    vmem_limit = int(min(64 << 20, max(8 << 20, 2 * vmem_est)))

    out_pad = pl.pallas_call(
        _dueling_kernel,
        out_shape=jax.ShapeDtypeStruct((b_pad, OUT_PAD), out_dtype),
        grid=(b_pad // tb,),
        in_specs=[
            pl.BlockSpec((tb, feat), lambda i: (i, 0)),
            pl.BlockSpec((feat, k_dim), lambda i: (0, 0)),    # VMEM-resident weights
            pl.BlockSpec((1, k_dim), lambda i: (0, 0)),
            pl.BlockSpec((k_dim, OUT_PAD), lambda i: (0, 0)),
            pl.BlockSpec((1, OUT_PAD), lambda i: (0, 0)),
        ],
        out_specs=pl.BlockSpec((tb, OUT_PAD), lambda i: (i, 0)),
        compiler_params=pltpu.CompilerParams(
            dimension_semantics=("parallel",),
            vmem_limit_bytes=vmem_limit,
        ),
    )(x, w1, b1, w2, b2)

    return out_pad[:batch, :n_actions].astype(x_nchw.dtype)


# --------------------------------------------------------------------------
# Deterministic params + references
# --------------------------------------------------------------------------
def make_params(key, feat, hidden, n_actions):
    ks = jax.random.split(key, 8)
    s1 = 1.0 / jnp.sqrt(feat)
    s2 = 1.0 / jnp.sqrt(hidden)
    return {
        "wa1": jax.random.uniform(ks[0], (feat, hidden), jnp.float32, -s1, s1),
        "ba1": jax.random.uniform(ks[1], (1, hidden), jnp.float32, -s1, s1),
        "wa2": jax.random.uniform(ks[2], (hidden, n_actions), jnp.float32, -s2, s2),
        "ba2": jax.random.uniform(ks[3], (1, n_actions), jnp.float32, -s2, s2),
        "wv1": jax.random.uniform(ks[4], (feat, hidden), jnp.float32, -s1, s1),
        "bv1": jax.random.uniform(ks[5], (1, hidden), jnp.float32, -s1, s1),
        "wv2": jax.random.uniform(ks[6], (hidden, 1), jnp.float32, -s2, s2),
        "bv2": jax.random.uniform(ks[7], (1, 1), jnp.float32, -s2, s2),
    }


def _reference_f32(x_nchw, p):
    """Pure-f32 reference mirroring the PyTorch module exactly."""
    x = x_nchw.reshape(x_nchw.shape[0], -1).astype(jnp.float32)
    ha = jnp.maximum(x @ p["wa1"] + p["ba1"], 0.0)
    adv = ha @ p["wa2"] + p["ba2"]
    hv = jnp.maximum(x @ p["wv1"] + p["bv1"], 0.0)
    val = hv @ p["wv2"] + p["bv2"]
    out = val + (adv - jnp.mean(adv, axis=1, keepdims=True))
    return out, adv


def _reference_fused(x_nchw, fused, n_actions, advantages_only,
                     out_dtype=jnp.bfloat16):
    """Mixed-precision mirror of the kernel math (same fused/folded weights)."""
    w1, b1, w2, b2 = fused["adv"] if advantages_only else fused["full"]
    x = x_nchw.reshape(x_nchw.shape[0], -1).astype(w1.dtype)
    h = jnp.maximum(jnp.dot(x, w1, preferred_element_type=jnp.float32) + b1, 0.0)
    y = jnp.dot(h.astype(w2.dtype), w2, preferred_element_type=jnp.float32) + b2
    return y.astype(out_dtype).astype(x_nchw.dtype)[:, :n_actions]


if __name__ == "__main__":
    key = jax.random.PRNGKey(0)
    kx, kp = jax.random.split(key)

    B, C, H, W = 2, 4, 16, 16
    HIDDEN, N_ACTIONS = 32, 6
    FEAT = C * H * W

    x = jax.random.normal(kx, (B, C, H, W), jnp.float32)
    params = make_params(kp, FEAT, HIDDEN, N_ACTIONS)

    # Fuse once per parameter update (hoisted out of the forward path).
    fused = fuse_dueling_params(params)

    fwd = jax.jit(dueling_forward, static_argnames=("n_actions", "advantages_only"))
    out = fwd(x, fused, N_ACTIONS, advantages_only=False)
    adv = fwd(x, fused, N_ACTIONS, advantages_only=True)
    jax.block_until_ready((out, adv))

    assert out.shape == (B, N_ACTIONS)
    assert adv.shape == (B, N_ACTIONS)
    assert out.dtype == x.dtype and adv.dtype == x.dtype

    # Tight check against the mixed-precision mirror of the kernel math.
    ref_out_mix = _reference_fused(x, fused, N_ACTIONS, advantages_only=False)
    ref_adv_mix = _reference_fused(x, fused, N_ACTIONS, advantages_only=True)
    assert jnp.allclose(out, ref_out_mix, atol=1e-2, rtol=1e-2)
    assert jnp.allclose(adv, ref_adv_mix, atol=1e-2, rtol=1e-2)

    # Loose sanity check against the pure-f32 semantics of the PyTorch module.
    ref_out_f32, ref_adv_f32 = _reference_f32(x, params)
    assert jnp.allclose(out, ref_out_f32, atol=5e-2, rtol=5e-2)
    assert jnp.allclose(adv, ref_adv_f32, atol=5e-2, rtol=5e-2)

    print("KERNEL_OK")
</pallas_src>

<mosaic_0001>
module attributes {stable_mosaic.version = 11 : i64} {
  func.func @_dueling_kernel(%arg0: i32, %arg1: memref<16x1024xf32, #tpu.memory_space<vmem>>, %arg2: memref<1024x128xbf16, #tpu.memory_space<vmem>>, %arg3: memref<1x128xf32, #tpu.memory_space<vmem>>, %arg4: memref<128x128xbf16, #tpu.memory_space<vmem>>, %arg5: memref<1x128xf32, #tpu.memory_space<vmem>>, %arg6: memref<16x128xbf16, #tpu.memory_space<vmem>>) attributes {dimension_semantics = [#tpu.dimension_semantics<parallel>], iteration_bounds = array<i64: 1>, scalar_prefetch = 0 : i64, scratch_operands = 0 : i64, tpu.core_type = #tpu.core_type<tc>, window_params = [{transform_indices = @transform_0, window_bounds = array<i64: 16, 1024>}, {pipeline_mode = #tpu.pipeline_mode<synchronous>, transform_indices = @transform_1, window_bounds = array<i64: 1024, 128>}, {pipeline_mode = #tpu.pipeline_mode<synchronous>, transform_indices = @transform_2, window_bounds = array<i64: 1, 128>}, {pipeline_mode = #tpu.pipeline_mode<synchronous>, transform_indices = @transform_3, window_bounds = array<i64: 128, 128>}, {pipeline_mode = #tpu.pipeline_mode<synchronous>, transform_indices = @transform_4, window_bounds = array<i64: 1, 128>}, {transform_indices = @transform_5, window_bounds = array<i64: 16, 128>}]} {
    %c0 = arith.constant 0 : index
    %c0_0 = arith.constant 0 : index
    %0 = vector.load %arg1[%c0, %c0_0] : memref<16x1024xf32, #tpu.memory_space<vmem>>, vector<16x1024xf32>
    %1 = arith.truncf %0 : vector<16x1024xf32> to vector<16x1024xbf16>
    %c0_1 = arith.constant 0 : index
    %c0_2 = arith.constant 0 : index
    %2 = vector.load %arg2[%c0_1, %c0_2] : memref<1024x128xbf16, #tpu.memory_space<vmem>>, vector<1024x128xbf16>
    %cst = arith.constant dense<0.000000e+00> : vector<16x128xf32>
    %3 = tpu.matmul %1, %2, %cst {dimension_numbers = #tpu.dot_dimension_numbers<[1], [0], [0], [1], [0, 0, 1, 1], [], []>} : vector<16x1024xbf16>, vector<1024x128xbf16>, vector<16x128xf32> -> vector<16x128xf32>
    %c0_3 = arith.constant 0 : index
    %c0_4 = arith.constant 0 : index
    %4 = vector.load %arg3[%c0_3, %c0_4] : memref<1x128xf32, #tpu.memory_space<vmem>>, vector<1x128xf32>
    %5 = vector.broadcast %4 : vector<1x128xf32> to vector<16x128xf32>
    %6 = arith.addf %3, %5 : vector<16x128xf32>
    %cst_5 = arith.constant 0.000000e+00 : f32
    %7 = vector.broadcast %cst_5 : f32 to vector<16x128xf32>
    %8 = arith.maximumf %6, %7 : vector<16x128xf32>
    %9 = arith.truncf %8 : vector<16x128xf32> to vector<16x128xbf16>
    %c0_6 = arith.constant 0 : index
    %c0_7 = arith.constant 0 : index
    %10 = vector.load %arg4[%c0_6, %c0_7] : memref<128x128xbf16, #tpu.memory_space<vmem>>, vector<128x128xbf16>
    %cst_8 = arith.constant dense<0.000000e+00> : vector<16x128xf32>
    %11 = tpu.matmul %9, %10, %cst_8 {dimension_numbers = #tpu.dot_dimension_numbers<[1], [0], [0], [1], [0, 0, 1, 1], [], []>} : vector<16x128xbf16>, vector<128x128xbf16>, vector<16x128xf32> -> vector<16x128xf32>
    %c0_9 = arith.constant 0 : index
    %c0_10 = arith.constant 0 : index
    %12 = vector.load %arg5[%c0_9, %c0_10] : memref<1x128xf32, #tpu.memory_space<vmem>>, vector<1x128xf32>
    %13 = vector.broadcast %12 : vector<1x128xf32> to vector<16x128xf32>
    %14 = arith.addf %11, %13 : vector<16x128xf32>
    %15 = arith.truncf %14 : vector<16x128xf32> to vector<16x128xbf16>
    %c0_11 = arith.constant 0 : index
    %c0_12 = arith.constant 0 : index
    %16 = vector.load %arg6[%c0_11, %c0_12] : memref<16x128xbf16, #tpu.memory_space<vmem>>, vector<16x128xbf16>
    tpu.vector_store %arg6[%c0_11, %c0_12], %15 {strides = array<i32>} : memref<16x128xbf16, #tpu.memory_space<vmem>>, vector<16x128xbf16>,
    return
  }
  func.func @transform_0(%arg0: i32) -> (i32, i32) {
    %c0_i32 = arith.constant 0 : i32
    %c0_i32_0 = arith.constant 0 : i32
    return %arg0, %c0_i32 : i32, i32
  }
  func.func @transform_1(%arg0: i32) -> (i32, i32) {
    %c0_i32 = arith.constant 0 : i32
    %c0_i32_0 = arith.constant 0 : i32
    %c0_i32_1 = arith.constant 0 : i32
    return %c0_i32, %c0_i32_0 : i32, i32
  }
  func.func @transform_2(%arg0: i32) -> (i32, i32) {
    %c0_i32 = arith.constant 0 : i32
    %c0_i32_0 = arith.constant 0 : i32
    %c0_i32_1 = arith.constant 0 : i32
    return %c0_i32, %c0_i32_0 : i32, i32
  }
  func.func @transform_3(%arg0: i32) -> (i32, i32) {
    %c0_i32 = arith.constant 0 : i32
    %c0_i32_0 = arith.constant 0 : i32
    %c0_i32_1 = arith.constant 0 : i32
    return %c0_i32, %c0_i32_0 : i32, i32
  }
  func.func @transform_4(%arg0: i32) -> (i32, i32) {
    %c0_i32 = arith.constant 0 : i32
    %c0_i32_0 = arith.constant 0 : i32
    %c0_i32_1 = arith.constant 0 : i32
    return %c0_i32, %c0_i32_0 : i32, i32
  }
  func.func @transform_5(%arg0: i32) -> (i32, i32) {
    %c0_i32 = arith.constant 0 : i32
    %c0_i32_0 = arith.constant 0 : i32
    return %arg0, %c0_i32 : i32, i32
  }
}

</mosaic_0001>

<bundles_post_ra>
// kernel: dueling_forward.1
= control target key start
LH: loop header
LB: loop body
LE: loop exit
PB: predicated region body
PF: predicated region fallthrough
CT: control target
= control target key end

     0   :  { %10 = vsyncpa [#allocation3], 0  ;;  %s1173_s18 = smov [#allocation2]   ;;  %s1301_s0 = inlined_call_operand.vmem [shape: f32[16,1024], index: 0, kind: input, shape index: {}]   ;;  %s1302_s1 = inlined_call_operand.hbm [shape: bf16[1024,128], index: 1, kind: input, shape index: {}]   ;;  %s1303_s2 = inlined_call_operand.vmem [shape: f32[1,128], index: 2, kind: input, shape index: {}]   ;;  %s1304_s3 = inlined_call_operand.vmem [shape: bf16[128,128], index: 3, kind: input, shape index: {}]   ;;  %s1305_s4 = inlined_call_operand.vmem [shape: f32[1,128], index: 4, kind: input, shape index: {}]   ;;  %s1306_s5 = inlined_call_operand.vmem [shape: bf16[16,128], index: 5, kind: output, shape index: {}]  }
   0x1   :  { %s18_s19 = sshll.u32 %s1173_s18, 4  ;;  %s1149_s22 = scalar_lea.hbm %s1302_s1, 8192  ;;  %s19_s19 = int_to_ptr.vmem [resolvable:$true] %s18_s19 }
   0x2   :  { %p1150_p0 = scmp.ne.s32.totalorder %s1302_s1, %s1149_s22  ;;  %p1153_p1 = scmp.lt.u32.totalorder %s1149_s22, %s1302_s1 }
   0x4   :  { %p1155_p2 = pnand %p1153_p1, %p1150_p0 }
   0x6   :  { %1158 = shalt.err (!%p1155_p2)
}
   0x7   :  { %s1159_s27 = scalar_lea.vmem %s19_s19, 8192  ;;  %p1164_p4 = scmp.lt.s32.totalorder %s19_s19, %s19_s19 }
   0x8   :  { %p1160_p3 = scmp.ne.s32.totalorder %s19_s19, %s1159_s27  ;;  %p1165_p5 = scmp.lt.s32.totalorder %s1159_s27, %s1159_s27 }
   0xa   :  { %p1166_p6 = por %p1165_p5, %p1164_p4 }
   0xc   :  { %p1167_p7 = pnand %p1166_p6, %p1160_p3 }
   0xe   :  { %1170 = shalt.err (!%p1167_p7)
}
   0xf   :  { %s1174_s28 = smov 64   ;;  %s1175_s29 = smov 4  }
  0x10   :  { %24 = dma.hbm_to_vmem [thread:$0]  %s1302_s1, 8192, %s19_s19, [#allocation3], %s1174_s28, %s1174_s28, %s1175_s29  }
  0x11   :  { %1171 = dma.done.wait [#allocation3], 8192  }
  0x12   :  { %1172 = vsyncadd [#allocation3], 4294959104  ;;  %v1077_v0 = vld [vmem:[#allocation2 + $0x40] sm:$0xff]   ;;  %v1081_v4 = vld [vmem:[#allocation2 + $0x48] sm:$0xff]   ;;  %vm1177_vm0 = vmmov 0  }
  0x13   :  { %v1078_v1 = vld [vmem:[#allocation2 + $0xc0] sm:$0xff]   ;;  %955 = vmatprep.subr.bf16.mxu0 %v1077_v0  ;;  %v1082_v5 = vld [vmem:[#allocation2 + $0xc8] sm:$0xff]   ;;  %v1085_v8 = vld [vmem:[#allocation2 + $0x50] sm:$0xff]  }
  0x14   :  { %v1079_v2 = vld [vmem:[#allocation2] sm:$0xff]   ;;  %977 = vmatprep.subr.bf16.mxu1 %v1078_v1  ;;  %v1083_v6 = vld [vmem:[#allocation2 + $0x8] sm:$0xff]   ;;  %v1086_v9 = vld [vmem:[#allocation2 + $0xd0] sm:$0xff]  }
  0x15   :  { %v1080_v3 = vld [vmem:[#allocation2 + $0x80] sm:$0xff]   ;;  %956 = vmatpush3.bf16.msra.mxu0 %v1079_v2  ;;  %v1084_v7 = vld [vmem:[#allocation2 + $0x88] sm:$0xff]   ;;  %v1087_v10 = vld [vmem:[#allocation2 + $0x10] sm:$0xff]  }
  0x16   :  { %978 = vmatpush3.bf16.msra.mxu1 %v1080_v3  ;;  %957 = vmatprep.subr.bf16.mxu0 %v1081_v4  ;;  %v1088_v11 = vld [vmem:[#allocation2 + $0x90] sm:$0xff]   ;;  %v1089_v12 = vld [vmem:[#allocation2 + $0x58] sm:$0xff]   ;;  %v1093_v16 = vld [vmem:[#allocation2 + $0x60] sm:$0xff]  }
  0x17   :  { %979 = vmatprep.subr.bf16.mxu1 %v1082_v5  ;;  %v1090_v13 = vld [vmem:[#allocation2 + $0xd8] sm:$0xff]   ;;  %v1094_v17 = vld [vmem:[#allocation2 + $0xe0] sm:$0xff]   ;;  %v1097_v20 = vld [vmem:[#allocation2 + $0x68] sm:$0xff]  }
  0x18   :  { %v1091_v14 = vld [vmem:[#allocation2 + $0x18] sm:$0xff]   ;;  %v1095_v18 = vld [vmem:[#allocation2 + $0x20] sm:$0xff]   ;;  %v1098_v21 = vld [vmem:[#allocation2 + $0xe8] sm:$0xff]  }
  0x19   :  { %958 = vmatpush3.bf16.msra.mxu0 %v1083_v6  ;;  %v1092_v15 = vld [vmem:[#allocation2 + $0x98] sm:$0xff]   ;;  %v1096_v19 = vld [vmem:[#allocation2 + $0xa0] sm:$0xff]   ;;  %v1099_v22 = vld [vmem:[#allocation2 + $0x28] sm:$0xff]  }
  0x1a   :  { %980 = vmatpush3.bf16.msra.mxu1 %v1084_v7  ;;  %959 = vmatprep.subr.bf16.mxu0 %v1085_v8  ;;  %v1100_v23 = vld [vmem:[#allocation2 + $0xa8] sm:$0xff]   ;;  %v1101_v24 = vld [vmem:[#allocation2 + $0x70] sm:$0xff]   ;;  %v1105_v28 = vld [vmem:[#allocation2 + $0x78] sm:$0xff]  }
  0x1b   :  { %981 = vmatprep.subr.bf16.mxu1 %v1086_v9  ;;  %v1102_v25 = vld [vmem:[#allocation2 + $0xf0] sm:$0xff]   ;;  %v1106_v29 = vld [vmem:[#allocation2 + $0xf8] sm:$0xff]   ;;  %v36_v32 = vld [vmem:[%s1301_s0 + $0x8] sm:$0xff] }
  0x1c   :  { %v1103_v26 = vld [vmem:[#allocation2 + $0x30] sm:$0xff]   ;;  %v1107_v30 = vld [vmem:[#allocation2 + $0x38] sm:$0xff]   ;;  %v44_v33 = vld [vmem:[%s1301_s0 + $0x48] sm:$0xff] }
  0x1d   :  { %960 = vmatpush3.bf16.msra.mxu0 %v1087_v10  ;;  %v1104_v27 = vld [vmem:[#allocation2 + $0xb0] sm:$0xff]   ;;  %v1108_v31 = vld [vmem:[#allocation2 + $0xb8] sm:$0xff]   ;;  %v52_v35 = vpack.c.bf16 %v44_v33, %v36_v32  ;;  %v35_v37 = vld [vmem:[%s1301_s0] sm:$0xff] }
  0x1e   :  { %982 = vmatpush3.bf16.msra.mxu1 %v1088_v11  ;;  %961 = vmatprep.subr.bf16.mxu0 %v1089_v12  ;;  %v38_v34 = vld [vmem:[%s1301_s0 + $0x18] sm:$0xff]  ;;  %v43_v38 = vld [vmem:[%s1301_s0 + $0x40] sm:$0xff]  ;;  %v37_v41 = vld [vmem:[%s1301_s0 + $0x10] sm:$0xff] }
  0x1f   :  { %983 = vmatprep.subr.bf16.mxu1 %v1090_v13  ;;  %v46_v36 = vld [vmem:[%s1301_s0 + $0x58] sm:$0xff]  ;;  %v51_v40 = vpack.c.bf16 %v43_v38, %v35_v37  ;;  %v45_v42 = vld [vmem:[%s1301_s0 + $0x50] sm:$0xff]  ;;  %610 = vmatprep.mubr.bf16.mxu0 %v52_v35  ;;  %v1109_v44 = vld [vmem:[#allocation2 + $0x140] sm:$0xff]  }
  0x20   :  { %v54_v39 = vpack.c.bf16 %v46_v36, %v38_v34  ;;  %v53_v43 = vpack.c.bf16 %v45_v42, %v37_v41  ;;  %v1110_v45 = vld [vmem:[#allocation2 + $0x1c0] sm:$0xff]   ;;  %v1113_v48 = vld [vmem:[#allocation2 + $0x148] sm:$0xff]   ;;  %v1117_v52 = vld [vmem:[#allocation2 + $0x150] sm:$0xff]  }
  0x21   :  { %962 = vmatpush3.bf16.msra.mxu0 %v1091_v14  ;;  %v1111_v46 = vld [vmem:[#allocation2 + $0x100] sm:$0xff]   ;;  %v1114_v49 = vld [vmem:[#allocation2 + $0x1c8] sm:$0xff]   ;;  %v1118_v53 = vld [vmem:[#allocation2 + $0x1d0] sm:$0xff]  }
  0x22   :  { %984 = vmatpush3.bf16.msra.mxu1 %v1092_v15  ;;  %963 = vmatprep.subr.bf16.mxu0 %v1093_v16  ;;  %v1112_v47 = vld [vmem:[#allocation2 + $0x180] sm:$0xff]   ;;  %v1115_v50 = vld [vmem:[#allocation2 + $0x108] sm:$0xff]   ;;  %v1119_v54 = vld [vmem:[#allocation2 + $0x110] sm:$0xff]  }
  0x23   :  { %985 = vmatprep.subr.bf16.mxu1 %v1094_v17  ;;  %651 = vmatprep.mubr.bf16.mxu1 %v54_v39  ;;  %v1116_v51 = vld [vmem:[#allocation2 + $0x188] sm:$0xff]   ;;  %v1120_v55 = vld [vmem:[#allocation2 + $0x190] sm:$0xff]   ;;  %v1121_v56 = vld [vmem:[#allocation2 + $0x158] sm:$0xff]  }
  0x24   :  { %v1122_v57 = vld [vmem:[#allocation2 + $0x1d8] sm:$0xff]   ;;  %v1125_v60 = vld [vmem:[#allocation2 + $0x160] sm:$0xff]   ;;  %v1129_v0 = vld [vmem:[#allocation2 + $0x168] sm:$0xff]  }
  0x25   :  { %964 = vmatpush3.bf16.msra.mxu0 %v1095_v18  ;;  %v1123_v58 = vld [vmem:[#allocation2 + $0x118] sm:$0xff]   ;;  %v1126_v61 = vld [vmem:[#allocation2 + $0x1e0] sm:$0xff]   ;;  %v1130_v1 = vld [vmem:[#allocation2 + $0x1e8] sm:$0xff]  }
  0x26   :  { %986 = vmatpush3.bf16.msra.mxu1 %v1096_v19  ;;  %965 = vmatprep.subr.bf16.mxu0 %v1097_v20  ;;  %v1124_v59 = vld [vmem:[#allocation2 + $0x198] sm:$0xff]   ;;  %v1127_v62 = vld [vmem:[#allocation2 + $0x120] sm:$0xff]   ;;  %v1131_v2 = vld [vmem:[#allocation2 + $0x128] sm:$0xff]  }
  0x27   :  { %987 = vmatprep.subr.bf16.mxu1 %v1098_v21  ;;  %v1128_v63 = vld [vmem:[#allocation2 + $0x1a0] sm:$0xff]   ;;  %v1132_v3 = vld [vmem:[#allocation2 + $0x1a8] sm:$0xff]   ;;  %v1133_v4 = vld [vmem:[#allocation2 + $0x170] sm:$0xff]  }
  0x28   :  { %v1134_v5 = vld [vmem:[#allocation2 + $0x1f0] sm:$0xff]   ;;  %v1137_v8 = vld [vmem:[#allocation2 + $0x178] sm:$0xff]   ;;  %v40_v12 = vld [vmem:[%s1301_s0 + $0x28] sm:$0xff] }
  0x29   :  { %966 = vmatpush3.bf16.msra.mxu0 %v1099_v22  ;;  %v1135_v6 = vld [vmem:[#allocation2 + $0x130] sm:$0xff]   ;;  %v1138_v9 = vld [vmem:[#allocation2 + $0x1f8] sm:$0xff]   ;;  %v48_v13 = vld [vmem:[%s1301_s0 + $0x68] sm:$0xff] }
  0x2a   :  { %988 = vmatpush3.bf16.msra.mxu1 %v1100_v23  ;;  %967 = vmatprep.subr.bf16.mxu0 %v1101_v24  ;;  %v1136_v7 = vld [vmem:[#allocation2 + $0x1b0] sm:$0xff]   ;;  %v1139_v10 = vld [vmem:[#allocation2 + $0x138] sm:$0xff]   ;;  %v56_v16 = vpack.c.bf16 %v48_v13, %v40_v12  ;;  %v39_v18 = vld [vmem:[%s1301_s0 + $0x20] sm:$0xff] }
  0x2b   :  { %989 = vmatprep.subr.bf16.mxu1 %v1102_v25  ;;  %v1140_v11 = vld [vmem:[#allocation2 + $0x1b8] sm:$0xff]   ;;  %v47_v19 = vld [vmem:[%s1301_s0 + $0x60] sm:$0xff]  ;;  %v41_v20 = vld [vmem:[%s1301_s0 + $0x30] sm:$0xff]  ;;  %v1176_v25 = vmov 0.0  }
  0x2c   :  { %v42_v14 = vld [vmem:[%s1301_s0 + $0x38] sm:$0xff]  ;;  %v55_v21 = vpack.c.bf16 %v47_v19, %v39_v18  ;;  %v49_v22 = vld [vmem:[%s1301_s0 + $0x70] sm:$0xff]  ;;  %v1141_v24 = vld [vmem:[%s1304_s3] sm:$0xff]  }
  0x2d   :  { %968 = vmatpush3.bf16.msra.mxu0 %v1103_v26  ;;  %v50_v15 = vld [vmem:[%s1301_s0 + $0x78] sm:$0xff]  ;;  %v57_v23 = vpack.c.bf16 %v49_v22, %v41_v20  ;;  %v1142_v26 = vld [vmem:[%s1304_s3 + $0x8] sm:$0xff]   ;;  %v872_v35 = vld [vmem:[%s1303_s2] ss:$0 sm:$0xff] }
  0x2e   :  { %990 = vmatpush3.bf16.msra.mxu1 %v1104_v27  ;;  %969 = vmatprep.subr.bf16.mxu0 %v1105_v28  ;;  %v58_v17 = vpack.c.bf16 %v50_v15, %v42_v14  ;;  %v1143_v27 = vld [vmem:[%s1304_s3 + $0x10] sm:$0xff]   ;;  %v1144_v28 = vld [vmem:[%s1304_s3 + $0x18] sm:$0xff]  }
  0x2f   :  { %991 = vmatprep.subr.bf16.mxu1 %v1106_v29  ;;  %v1145_v29 = vld [vmem:[%s1304_s3 + $0x20] sm:$0xff]   ;;  %v1148_v32 = vld [vmem:[%s1304_s3 + $0x38] sm:$0xff]  }
  0x31   :  { %970 = vmatpush3.bf16.msra.mxu0 %v1107_v30  ;;  %v1146_v30 = vld [vmem:[%s1304_s3 + $0x28] sm:$0xff]  }
  0x32   :  { %992 = vmatpush3.bf16.msra.mxu1 %v1108_v31  ;;  %999 = vmatprep.subr.bf16.mxu0 %v1109_v44  ;;  %v1147_v31 = vld [vmem:[%s1304_s3 + $0x30] sm:$0xff]  }
  0x33   :  { %1021 = vmatprep.subr.bf16.mxu1 %v1110_v45 }
  0x34   :  { %611 = vmatmul.mubr.bf16.vlgmr.msra.gmra.mrb[0].mxu0 %v51_v40 }
  0x35   :  { %652 = vmatmul.mubr.bf16.vlgmr.msra.gmra.mrb[0].mxu1 %v53_v43  ;;  %1000 = vmatpush3.bf16.msra.mxu0 %v1111_v46 }
  0x36   :  { %1022 = vmatpush3.bf16.msra.mxu1 %v1112_v47  ;;  %1001 = vmatprep.subr.bf16.mxu0 %v1113_v48 }
  0x37   :  { %1023 = vmatprep.subr.bf16.mxu1 %v1114_v49  ;;  %692 = vmatprep.mubr.bf16.mxu0 %v56_v16 }
  0x38   :  { %733 = vmatprep.mubr.bf16.mxu1 %v58_v17 }
  0x39   :  { %1002 = vmatpush3.bf16.msra.mxu0 %v1115_v50 }
  0x3a   :  { %1024 = vmatpush3.bf16.msra.mxu1 %v1116_v51  ;;  %1003 = vmatprep.subr.bf16.mxu0 %v1117_v52 }
  0x3b   :  { %1025 = vmatprep.subr.bf16.mxu1 %v1118_v53 }
  0x3d   :  { %1004 = vmatpush3.bf16.msra.mxu0 %v1119_v54 }
  0x3e   :  { %1026 = vmatpush3.bf16.msra.mxu1 %v1120_v55  ;;  %1005 = vmatprep.subr.bf16.mxu0 %v1121_v56 }
  0x3f   :  { %1027 = vmatprep.subr.bf16.mxu1 %v1122_v57 }
  0x41   :  { %1006 = vmatpush3.bf16.msra.mxu0 %v1123_v58 }
  0x42   :  { %1028 = vmatpush3.bf16.msra.mxu1 %v1124_v59  ;;  %1007 = vmatprep.subr.bf16.mxu0 %v1125_v60 }
  0x43   :  { %1029 = vmatprep.subr.bf16.mxu1 %v1126_v61 }
  0x45   :  { %1008 = vmatpush3.bf16.msra.mxu0 %v1127_v62 }
  0x46   :  { %1030 = vmatpush3.bf16.msra.mxu1 %v1128_v63  ;;  %1009 = vmatprep.subr.bf16.mxu0 %v1129_v0 }
  0x47   :  { %1031 = vmatprep.subr.bf16.mxu1 %v1130_v1 }
  0x49   :  { %1010 = vmatpush3.bf16.msra.mxu0 %v1131_v2 }
  0x4a   :  { %1032 = vmatpush3.bf16.msra.mxu1 %v1132_v3  ;;  %1011 = vmatprep.subr.bf16.mxu0 %v1133_v4 }
  0x4b   :  { %1033 = vmatprep.subr.bf16.mxu1 %v1134_v5  ;;  %v937_v5 = vld [vmem:[%s1305_s4] ss:$0 sm:$0xff] }
  0x4d   :  { %1012 = vmatpush3.bf16.msra.mxu0 %v1135_v6 }
  0x4e   :  { %1034 = vmatpush3.bf16.msra.mxu1 %v1136_v7  ;;  %1013 = vmatprep.subr.bf16.mxu0 %v1137_v8 }
  0x4f   :  { %1035 = vmatprep.subr.bf16.mxu1 %v1138_v9 }
  0x51   :  { %1014 = vmatpush3.bf16.msra.mxu0 %v1139_v10 }
  0x52   :  { %1036 = vmatpush3.bf16.msra.mxu1 %v1140_v11  ;;  %1052 = vmatprep.subr.bf16.mxu0 %v1176_v25 }
  0x54   :  { %693 = vmatmul.mubr.bf16.vlgmr.msra.gmra.mrb[4].mxu0 %v55_v21 }
  0x55   :  { %734 = vmatmul.mubr.bf16.vlgmr.msra.gmra.mrb[4].mxu1 %v57_v23  ;;  %1053 = vmatpush3.bf16.msra.mxu0 %v1141_v24 }
  0x56   :  { %1054 = vmatprep.subr.bf16.mxu0 %v1176_v25  ;;  %1068 = vmatprep.mubr.msk.bf16.mxu0 %vm1177_vm0, %v1176_v25 }
  0x59   :  { %1055 = vmatpush3.bf16.msra.mxu0 %v1142_v26 }
  0x5a   :  { %1056 = vmatprep.subr.bf16.mxu0 %v1176_v25 }
  0x5d   :  { %1057 = vmatpush3.bf16.msra.mxu0 %v1143_v27 }
  0x5e   :  { %1058 = vmatprep.subr.bf16.mxu0 %v1176_v25 }
  0x61   :  { %1059 = vmatpush3.bf16.msra.mxu0 %v1144_v28 }
  0x62   :  { %1060 = vmatprep.subr.bf16.mxu0 %v1176_v25 }
  0x65   :  { %1061 = vmatpush3.bf16.msra.mxu0 %v1145_v29 }
  0x66   :  { %1062 = vmatprep.subr.bf16.mxu0 %v1176_v25 }
  0x69   :  { %1063 = vmatpush3.bf16.msra.mxu0 %v1146_v30 }
  0x6a   :  { %1064 = vmatprep.subr.bf16.mxu0 %v1176_v25 }
  0x6d   :  { %1065 = vmatpush3.bf16.msra.mxu0 %v1147_v31 }
  0x6e   :  { %1066 = vmatprep.subr.bf16.mxu0 %v1176_v25 }
  0x71   :  { %1067 = vmatpush3.bf16.msra.mxu0 %v1148_v32 }
 0x107   :  { %v971_v33 = vpop.f32.mrb[0].mxu0 }
 0x108   :  { %v993_v34 = vpop.f32.mrb[0].mxu1  ;;  %v972_v36 = vpop.f32.mrb[1].mxu0 }
 0x109   :  { %v973_v37 = vadd.f32 %v972_v36, %v971_v33  ;;  %v994_v38 = vpop.f32.mrb[1].mxu1  ;;  %v974_v39 = vpop.f32.mrb[2].mxu0 }
 0x10a   :  { %v995_v40 = vadd.f32 %v994_v38, %v993_v34  ;;  %v996_v41 = vpop.f32.mrb[2].mxu1  ;;  %v975_v42 = vpop.f32.mrb[3].mxu0 }
 0x10b   :  { %v613_v43 = vadd.f32 %v973_v37, %v872_v35  ;;  %v976_v44 = vadd.f32 %v975_v42, %v974_v39  ;;  %v997_v45 = vpop.f32.mrb[3].mxu1 }
 0x10c   :  { %v998_v46 = vadd.f32 %v997_v45, %v996_v41 }
 0x10d   :  { %v654_v47 = vadd.f32 %v995_v40, %v613_v43  ;;  %v616_v48 = vadd.f32 %v976_v44, %v872_v35 }
 0x10f   :  { %v657_v49 = vadd.f32 %v998_v46, %v616_v48 }
 0x127   :  { %v1015_v50 = vpop.f32.mrb[4].mxu0 }
 0x128   :  { %v1037_v51 = vpop.f32.mrb[4].mxu1  ;;  %v1016_v52 = vpop.f32.mrb[5].mxu0 }
 0x129   :  { %v1017_v53 = vadd.f32 %v1016_v52, %v1015_v50  ;;  %v1038_v54 = vpop.f32.mrb[5].mxu1  ;;  %v1018_v55 = vpop.f32.mrb[6].mxu0 }
 0x12a   :  { %v1039_v56 = vadd.f32 %v1038_v54, %v1037_v51  ;;  %v1040_v57 = vpop.f32.mrb[6].mxu1  ;;  %v1019_v58 = vpop.f32.mrb[7].mxu0 }
 0x12b   :  { %v695_v59 = vadd.f32 %v1017_v53, %v654_v47  ;;  %v1020_v60 = vadd.f32 %v1019_v58, %v1018_v55  ;;  %v1041_v61 = vpop.f32.mrb[7].mxu1 }
 0x12c   :  { %v1042_v62 = vadd.f32 %v1041_v61, %v1040_v57 }
 0x12d   :  { %v736_v63 = vadd.f32 %v1039_v56, %v695_v59  ;;  %v698_v0 = vadd.f32 %v1020_v60, %v657_v49 }
 0x12f   :  { %v739_v1 = vadd.f32 %v1042_v62, %v698_v0  ;;  %v742_v2 = vmax.f32 %v736_v63, 0.0 }
 0x131   :  { %v743_v3 = vmax.f32 %v739_v1, 0.0 }
 0x133   :  { %v744_v4 = vpack.c.bf16 %v743_v3, %v742_v2 }
 0x135   :  { %1069 = vmatmul.mubr.bf16.vlgmr.msra.gmra.mrb[8].mxu0 %v744_v4 }
 0x208   :  { %v850_v6 = vpop.f32.mrb[8].mxu0 }
 0x209   :  { %v1070_v7 = vpop.f32.mrb[9].mxu0  ;;  %v851_v9 = vadd.f32 %v937_v5, %v850_v6 }
 0x20a   :  { %v853_v8 = vpop.f32.mrb[10].mxu0 }
 0x20b   :  { %v854_v10 = vadd.f32 %v937_v5, %v853_v8  ;;  %v1071_v11 = vpop.f32.mrb[11].mxu0 }
 0x20d   :  { %v953_v12 = vpack.c.bf16 %v854_v10, %v851_v9 }
 0x20f   :  { %954 = vst [vmem:[%s1306_s5] sm:$0xff] %v953_v12  }
 0x210   :  { %871 = vsyncpa [#allocation3], 1 }

</bundles_post_ra>
